<compile_context>
chip_gen: v5e
topology: v5e:2x2
jax: 0.10.0
libtpu: 0.0.40
codegen_flags: <defaults>
</compile_context>

<pallas_src>
import jax
import jax.numpy as jnp
from jax.experimental import pallas as pl
from jax.experimental.pallas import tpu as pltpu


def _round_up(x, m):
    return (x + m - 1) // m * m


def _pad2d(x, rows, cols):
    return jnp.pad(x, ((0, rows - x.shape[0]), (0, cols - x.shape[1])))


# ----------------------------------------------------------------------------
# Kernel
# ----------------------------------------------------------------------------
def _critic_mlp_kernel(x_ref, w1_ref, b1_ref, w2_ref, b2_ref, w3_ref, b3_ref,
                       o_ref):
    """Feature-major fused MLP. Batch is on the lane axis everywhere.

    x_ref  (SAp, TB)  : bf16 activations = [obs; action] feature-major
    wN_ref (out, in)  : bf16 weights (PyTorch Linear layout, zero-padded)
    bN_ref (out, 1)   : f32 biases
    o_ref  (1, TB)    : lane-dense f32 output
    """
    mxu = w1_ref.dtype

    # Layer 1 (concat already fused into the single x slab / W1).
    h1 = jnp.dot(w1_ref[...], x_ref[...],
                 preferred_element_type=jnp.float32) + b1_ref[...]   # (H1p, TB)
    h1 = jnp.maximum(h1, 0.0)                                        # ReLU (f32)

    # Layer 2.
    h2 = jnp.dot(w2_ref[...], h1.astype(mxu),
                 preferred_element_type=jnp.float32) + b2_ref[...]   # (H2p, TB)
    h2 = jnp.maximum(h2, 0.0)

    # Head: (1, H2p) @ (H2p, TB) -> (1, TB): lane-dense store.
    y = jnp.dot(w3_ref[...], h2.astype(mxu),
                preferred_element_type=jnp.float32) + b3_ref[...]
    o_ref[...] = y.astype(o_ref.dtype)


# ----------------------------------------------------------------------------
# Wrapper
# ----------------------------------------------------------------------------
_VMEM_TILE_BUDGET = 12 * 1024 * 1024   # conservative; safe for v7x (64/32 MiB)


def _tile_vmem_bytes(TB, SAp, H1p, H2p, itemsize):
    streamed = 2 * (SAp * TB * itemsize) + 2 * (TB * 4)        # x in / y out (x2 buf)
    resident = (2 * (H1p * SAp + H2p * H1p + H2p) * itemsize   # weights (x2 buf)
                + 2 * (H1p + H2p + 1) * 4)                     # biases  (x2 buf)
    live = (H1p + H2p) * TB * (4 + itemsize)                   # h1/h2 f32 + bf16 cast
    return streamed + resident + live


def _pick_batch_tiling(B, batch_tile, SAp, H1p, H2p, itemsize):
    """Largest lane-dense tile within the VMEM budget; >=2 tiles when B >= 256
    so v7x's second TensorCore gets work under dimension_semantics=parallel."""
    tb = max(128, (batch_tile // 128) * 128)
    while tb > 128 and _tile_vmem_bytes(tb, SAp, H1p, H2p, itemsize) > _VMEM_TILE_BUDGET:
        tb = max(128, _round_up(tb // 2, 128))

    B128 = _round_up(B, 128)
    if B128 > tb:
        TB = tb
        B_pad = _round_up(B, TB)
    elif B128 >= 256:
        TB = _round_up(-(-B // 2), 128)        # two tiles
        B_pad = 2 * TB
    else:
        TB = 128                               # lane-dense even for tiny batches
        B_pad = 128
    return TB, B_pad


def prepare_critic_params(params, mxu_dtype=jnp.bfloat16):
    """Pad/cast PyTorch-layout params once (hoist out of the per-call path).

    Hidden dims are padded only to the bf16 sublane multiple (16); zero padding
    is numerically inert through bias-add + ReLU + the next zero-padded layer.
    """
    W1, b1, W2, b2, W3, b3 = params
    H1, SA = W1.shape
    H2 = W2.shape[0]
    assert W2.shape[1] == H1 and W3.shape == (1, H2)
    SAp = _round_up(SA, 16)
    H1p = _round_up(H1, 16)
    H2p = _round_up(H2, 16)
    w1p = _pad2d(W1, H1p, SAp).astype(mxu_dtype)
    w2p = _pad2d(W2, H2p, H1p).astype(mxu_dtype)
    w3p = _pad2d(W3, 1, H2p).astype(mxu_dtype)
    b1p = _pad2d(b1.reshape(-1, 1), H1p, 1).astype(jnp.float32)
    b2p = _pad2d(b2.reshape(-1, 1), H2p, 1).astype(jnp.float32)
    b3p = b3.reshape(1, 1).astype(jnp.float32)
    return (w1p, b1p, w2p, b2p, w3p, b3p)


def critic_forward(obs, action, params=None, *, batch_tile=8192,
                   mxu_dtype=jnp.bfloat16, prepped_params=None):
    """obs (B, S), action (B, A), params in PyTorch Linear layout
    (W: (out, in), b: (out,)) -> (B,) critic values (matches torch .squeeze())."""
    if prepped_params is None:
        assert params is not None
        prepped_params = prepare_critic_params(params, mxu_dtype)
    w1p, b1p, w2p, b2p, w3p, b3p = prepped_params
    mxu = w1p.dtype
    itemsize = jnp.dtype(mxu).itemsize
    H1p, SAp = w1p.shape
    H2p = w2p.shape[0]

    B, S = obs.shape
    A = action.shape[1]
    SA = S + A
    assert SA <= SAp

    TB, B_pad = _pick_batch_tiling(B, batch_tile, SAp, H1p, H2p, itemsize)
    num_tiles = B_pad // TB

    # Single fused re-layout pass: concat (the torch reference materializes
    # cat(X) anyway) + cast + transpose + pad -> (SAp, B_pad) bf16.
    x_fm = jnp.concatenate([obs, action], axis=1).astype(mxu).T      # (SA, B)
    x_fm = jnp.pad(x_fm, ((0, SAp - SA), (0, B_pad - B)))            # (SAp, B_pad)

    grid_spec = pltpu.PrefetchScalarGridSpec(
        num_scalar_prefetch=0,
        grid=(num_tiles,),
        in_specs=[
            pl.BlockSpec((SAp, TB), lambda i: (0, i)),      # activations (streamed)
            pl.BlockSpec((H1p, SAp), lambda i: (0, 0)),     # weights stay resident
            pl.BlockSpec((H1p, 1), lambda i: (0, 0)),
            pl.BlockSpec((H2p, H1p), lambda i: (0, 0)),
            pl.BlockSpec((H2p, 1), lambda i: (0, 0)),
            pl.BlockSpec((1, H2p), lambda i: (0, 0)),
            pl.BlockSpec((1, 1), lambda i: (0, 0)),
        ],
        out_specs=pl.BlockSpec((1, TB), lambda i: (0, i)),  # lane-dense output
    )

    flops = 2 * B_pad * (H1p * SAp + H2p * H1p + H2p)
    bytes_accessed = (SAp * B_pad * itemsize                         # activations
                      + (H1p * SAp + H2p * H1p + H2p) * itemsize     # weights
                      + (H1p + H2p + 1) * 4                          # biases
                      + B_pad * 4)                                   # output

    out = pl.pallas_call(
        _critic_mlp_kernel,
        out_shape=jax.ShapeDtypeStruct((1, B_pad), jnp.float32),
        grid_spec=grid_spec,
        compiler_params=pltpu.CompilerParams(
            dimension_semantics=("parallel",),
            vmem_limit_bytes=32 * 1024 * 1024),
        cost_estimate=pl.CostEstimate(flops=flops, transcendentals=0,
                                      bytes_accessed=bytes_accessed),
    )(x_fm, w1p, b1p, w2p, b2p, w3p, b3p)

    return jnp.squeeze(out[:, :B])             # matches torch .squeeze()


# ----------------------------------------------------------------------------
# Params / references
# ----------------------------------------------------------------------------
def init_critic_params(key, state_size, action_size, hidden_layers):
    """PyTorch nn.Linear layout: W (out, in), b (out,)."""
    dims = (state_size + action_size, *hidden_layers, 1)
    params = []
    for i in range(len(dims) - 1):
        key, kw, kb = jax.random.split(key, 3)
        bound = 1.0 / float(dims[i]) ** 0.5
        w = jax.random.uniform(kw, (dims[i + 1], dims[i]), jnp.float32, -bound, bound)
        b = jax.random.uniform(kb, (dims[i + 1],), jnp.float32, -bound, bound)
        params += [w, b]
    return tuple(params)


def _ref_f32(obs, action, params):
    W1, b1, W2, b2, W3, b3 = params
    x = jnp.concatenate([obs, action], axis=1)
    h = jnp.maximum(x @ W1.T + b1, 0.0)
    h = jnp.maximum(h @ W2.T + b2, 0.0)
    return (h @ W3.T + b3).squeeze()


def _ref_mxu(obs, action, params, dtype):
    """Mirrors the kernel's bf16-operand / f32-accumulate matmuls."""
    W1, b1, W2, b2, W3, b3 = params
    x = jnp.concatenate([obs, action], axis=1).astype(dtype)
    h = jnp.dot(x, W1.T.astype(dtype), preferred_element_type=jnp.float32) + b1
    h = jnp.maximum(h, 0.0)
    h = jnp.dot(h.astype(dtype), W2.T.astype(dtype),
                preferred_element_type=jnp.float32) + b2
    h = jnp.maximum(h, 0.0)
    y = jnp.dot(h.astype(dtype), W3.T.astype(dtype),
                preferred_element_type=jnp.float32) + b3
    return y.squeeze()


if __name__ == "__main__":
    key = jax.random.PRNGKey(0)
    S, A = 12, 4
    hidden_layers = (32, 32)
    kp, ko, ka, ko2, ka2 = jax.random.split(key, 5)
    params = init_critic_params(kp, S, A, hidden_layers)

    # --- small batch: single lane-dense tile -------------------------------
    B = 8
    obs = jax.random.normal(ko, (B, S), jnp.float32)
    action = jax.random.normal(ka, (B, A), jnp.float32)
    q = jax.jit(critic_forward)(obs, action, params)
    jax.block_until_ready(q)
    assert q.shape == (B,)
    # Tight check vs a reference using the same bf16-operand / f32-accum math.
    assert jnp.allclose(q, _ref_mxu(obs, action, params, jnp.bfloat16),
                        atol=1e-3, rtol=1e-3)
    # Loose check vs the pure-f32 PyTorch-equivalent forward.
    assert jnp.allclose(q, _ref_f32(obs, action, params), atol=5e-2, rtol=5e-2)

    # --- larger, non-tile-aligned batch: exercises the multi-tile "parallel"
    # path and the cached prepped-params path --------------------------------
    B2 = 300
    obs2 = jax.random.normal(ko2, (B2, S), jnp.float32)
    action2 = jax.random.normal(ka2, (B2, A), jnp.float32)
    prepped = prepare_critic_params(params)
    fwd = jax.jit(lambda o, a, pp: critic_forward(o, a, prepped_params=pp))
    q2 = fwd(obs2, action2, prepped)
    jax.block_until_ready(q2)
    assert q2.shape == (B2,)
    assert jnp.allclose(q2, _ref_mxu(obs2, action2, params, jnp.bfloat16),
                        atol=1e-3, rtol=1e-3)

    print("KERNEL_OK")
</pallas_src>

<mosaic_0001>
module attributes {stable_mosaic.version = 11 : i64} {
  func.func @_critic_mlp_kernel(%arg0: i32, %arg1: memref<16x128xbf16, #tpu.memory_space<vmem>>, %arg2: memref<32x16xbf16, #tpu.memory_space<vmem>>, %arg3: memref<32x1xf32, #tpu.memory_space<vmem>>, %arg4: memref<32x32xbf16, #tpu.memory_space<vmem>>, %arg5: memref<32x1xf32, #tpu.memory_space<vmem>>, %arg6: memref<1x32xbf16, #tpu.memory_space<vmem>>, %arg7: memref<1x1xf32, #tpu.memory_space<vmem>>, %arg8: memref<1x128xf32, #tpu.memory_space<vmem>>) attributes {dimension_semantics = [#tpu.dimension_semantics<parallel>], iteration_bounds = array<i64: 1>, scalar_prefetch = 0 : i64, scratch_operands = 0 : i64, tpu.core_type = #tpu.core_type<tc>, window_params = [{transform_indices = @transform_0, window_bounds = array<i64: 16, 128>}, {pipeline_mode = #tpu.pipeline_mode<synchronous>, transform_indices = @transform_1, window_bounds = array<i64: 32, 16>}, {pipeline_mode = #tpu.pipeline_mode<synchronous>, transform_indices = @transform_2, window_bounds = array<i64: 32, 1>}, {pipeline_mode = #tpu.pipeline_mode<synchronous>, transform_indices = @transform_3, window_bounds = array<i64: 32, 32>}, {pipeline_mode = #tpu.pipeline_mode<synchronous>, transform_indices = @transform_4, window_bounds = array<i64: 32, 1>}, {pipeline_mode = #tpu.pipeline_mode<synchronous>, transform_indices = @transform_5, window_bounds = array<i64: 1, 32>}, {pipeline_mode = #tpu.pipeline_mode<synchronous>, transform_indices = @transform_6, window_bounds = array<i64: 1, 1>}, {transform_indices = @transform_7, window_bounds = array<i64: 1, 128>}]} {
    %c0 = arith.constant 0 : index
    %c0_0 = arith.constant 0 : index
    %0 = vector.load %arg2[%c0, %c0_0] : memref<32x16xbf16, #tpu.memory_space<vmem>>, vector<32x16xbf16>
    %c0_1 = arith.constant 0 : index
    %c0_2 = arith.constant 0 : index
    %1 = vector.load %arg1[%c0_1, %c0_2] : memref<16x128xbf16, #tpu.memory_space<vmem>>, vector<16x128xbf16>
    %cst = arith.constant dense<0.000000e+00> : vector<32x128xf32>
    %2 = tpu.matmul %0, %1, %cst {dimension_numbers = #tpu.dot_dimension_numbers<[1], [0], [0], [1], [0, 0, 1, 1], [], []>} : vector<32x16xbf16>, vector<16x128xbf16>, vector<32x128xf32> -> vector<32x128xf32>
    %c0_3 = arith.constant 0 : index
    %c0_4 = arith.constant 0 : index
    %3 = vector.load %arg3[%c0_3, %c0_4] : memref<32x1xf32, #tpu.memory_space<vmem>>, vector<32x1xf32>
    %4 = vector.broadcast %3 : vector<32x1xf32> to vector<32x128xf32>
    %5 = arith.addf %2, %4 : vector<32x128xf32>
    %cst_5 = arith.constant 0.000000e+00 : f32
    %6 = vector.broadcast %cst_5 : f32 to vector<32x128xf32>
    %7 = arith.maximumf %5, %6 : vector<32x128xf32>
    %c0_6 = arith.constant 0 : index
    %c0_7 = arith.constant 0 : index
    %8 = vector.load %arg4[%c0_6, %c0_7] : memref<32x32xbf16, #tpu.memory_space<vmem>>, vector<32x32xbf16>
    %9 = arith.truncf %7 : vector<32x128xf32> to vector<32x128xbf16>
    %cst_8 = arith.constant dense<0.000000e+00> : vector<32x128xf32>
    %10 = tpu.matmul %8, %9, %cst_8 {dimension_numbers = #tpu.dot_dimension_numbers<[1], [0], [0], [1], [0, 0, 1, 1], [], []>} : vector<32x32xbf16>, vector<32x128xbf16>, vector<32x128xf32> -> vector<32x128xf32>
    %c0_9 = arith.constant 0 : index
    %c0_10 = arith.constant 0 : index
    %11 = vector.load %arg5[%c0_9, %c0_10] : memref<32x1xf32, #tpu.memory_space<vmem>>, vector<32x1xf32>
    %12 = vector.broadcast %11 : vector<32x1xf32> to vector<32x128xf32>
    %13 = arith.addf %10, %12 : vector<32x128xf32>
    %cst_11 = arith.constant 0.000000e+00 : f32
    %14 = vector.broadcast %cst_11 : f32 to vector<32x128xf32>
    %15 = arith.maximumf %13, %14 : vector<32x128xf32>
    %c0_12 = arith.constant 0 : index
    %c0_13 = arith.constant 0 : index
    %16 = vector.load %arg6[%c0_12, %c0_13] : memref<1x32xbf16, #tpu.memory_space<vmem>>, vector<1x32xbf16>
    %17 = arith.truncf %15 : vector<32x128xf32> to vector<32x128xbf16>
    %cst_14 = arith.constant dense<0.000000e+00> : vector<1x128xf32>
    %18 = tpu.matmul %16, %17, %cst_14 {dimension_numbers = #tpu.dot_dimension_numbers<[1], [0], [0], [1], [0, 0, 1, 1], [], []>} : vector<1x32xbf16>, vector<32x128xbf16>, vector<1x128xf32> -> vector<1x128xf32>
    %c0_15 = arith.constant 0 : index
    %c0_16 = arith.constant 0 : index
    %19 = vector.load %arg7[%c0_15, %c0_16] : memref<1x1xf32, #tpu.memory_space<vmem>>, vector<1x1xf32>
    %20 = vector.broadcast %19 : vector<1x1xf32> to vector<1x128xf32>
    %21 = arith.addf %18, %20 : vector<1x128xf32>
    %c0_17 = arith.constant 0 : index
    %c0_18 = arith.constant 0 : index
    %22 = vector.load %arg8[%c0_17, %c0_18] : memref<1x128xf32, #tpu.memory_space<vmem>>, vector<1x128xf32>
    tpu.vector_store %arg8[%c0_17, %c0_18], %21 {strides = array<i32>} : memref<1x128xf32, #tpu.memory_space<vmem>>, vector<1x128xf32>,
    return
  }
  func.func @transform_0(%arg0: i32) -> (i32, i32) {
    %c0_i32 = arith.constant 0 : i32
    %c0_i32_0 = arith.constant 0 : i32
    return %c0_i32, %arg0 : i32, i32
  }
  func.func @transform_1(%arg0: i32) -> (i32, i32) {
    %c0_i32 = arith.constant 0 : i32
    %c0_i32_0 = arith.constant 0 : i32
    %c0_i32_1 = arith.constant 0 : i32
    return %c0_i32, %c0_i32_0 : i32, i32
  }
  func.func @transform_2(%arg0: i32) -> (i32, i32) {
    %c0_i32 = arith.constant 0 : i32
    %c0_i32_0 = arith.constant 0 : i32
    %c0_i32_1 = arith.constant 0 : i32
    return %c0_i32, %c0_i32_0 : i32, i32
  }
  func.func @transform_3(%arg0: i32) -> (i32, i32) {
    %c0_i32 = arith.constant 0 : i32
    %c0_i32_0 = arith.constant 0 : i32
    %c0_i32_1 = arith.constant 0 : i32
    return %c0_i32, %c0_i32_0 : i32, i32
  }
  func.func @transform_4(%arg0: i32) -> (i32, i32) {
    %c0_i32 = arith.constant 0 : i32
    %c0_i32_0 = arith.constant 0 : i32
    %c0_i32_1 = arith.constant 0 : i32
    return %c0_i32, %c0_i32_0 : i32, i32
  }
  func.func @transform_5(%arg0: i32) -> (i32, i32) {
    %c0_i32 = arith.constant 0 : i32
    %c0_i32_0 = arith.constant 0 : i32
    %c0_i32_1 = arith.constant 0 : i32
    return %c0_i32, %c0_i32_0 : i32, i32
  }
  func.func @transform_6(%arg0: i32) -> (i32, i32) {
    %c0_i32 = arith.constant 0 : i32
    %c0_i32_0 = arith.constant 0 : i32
    %c0_i32_1 = arith.constant 0 : i32
    return %c0_i32, %c0_i32_0 : i32, i32
  }
  func.func @transform_7(%arg0: i32) -> (i32, i32) {
    %c0_i32 = arith.constant 0 : i32
    %c0_i32_0 = arith.constant 0 : i32
    return %c0_i32, %arg0 : i32, i32
  }
}

</mosaic_0001>

<bundles_post_ra>
// kernel: critic_forward.1
= control target key start
LH: loop header
LB: loop body
LE: loop exit
PB: predicated region body
PF: predicated region fallthrough
CT: control target
= control target key end

     0   :  { %v242_v1 = vmov 0   ;;  %vm75_vm0 = vcmask 130048   ;;  %vm145_vm1 = vcmask 261120   ;;  %s334_s0 = inlined_call_operand.vmem [shape: bf16[16,128], index: 0, kind: input, shape index: {}]   ;;  %s335_s1 = inlined_call_operand.vmem [shape: bf16[32,16], index: 1, kind: input, shape index: {}]   ;;  %s336_s2 = inlined_call_operand.vmem [shape: f32[32,1], index: 2, kind: input, shape index: {}]   ;;  %s337_s4 = inlined_call_operand.vmem [shape: f32[32,1], index: 4, kind: input, shape index: {}]   ;;  %s338_s6 = inlined_call_operand.<no memory space> [shape: f32[1,1], index: 6, kind: input, shape index: {}]   ;;  %s339_s3 = inlined_call_operand.vmem [shape: bf16[32,32], index: 3, kind: input, shape index: {}]   ;;  %s340_s5 = inlined_call_operand.vmem [shape: bf16[1,32], index: 5, kind: input, shape index: {}]   ;;  %s341_s7 = inlined_call_operand.vmem [shape: f32[1,128], index: 7, kind: output, shape index: {}]  }
   0x1   :  { %v233_v0 = vld [vmem:[%s334_s0] sm:$0xff]  ;;  %240 = vset.pattern.permute.xlu1 %v242_v1  ;;  %239 = vset.pattern.permute.xlu0 %v242_v1  ;;  %v37_v2 = vld [vmem:[%s336_s2 + $0x10] sm:$0xff]  ;;  %v38_v5 = vld [vmem:[%s336_s2 + $0x18] sm:$0xff]  ;;  %v12_v12 = vstv %s338_s6 }
   0x2   :  { %v231_v3 = vld [vmem:[%s335_s1] sm:$0xff]  ;;  %51 = vperm.xlu0 %239, %v37_v2   ;;  %241 = vset.pattern.permute.xlu2 %v242_v1  ;;  %v36_v6 = vld [vmem:[%s336_s2 + $0x8] sm:$0xff]  ;;  %v113_v11 = vld [vmem:[%s337_s4 + $0x10] sm:$0xff]  ;;  %13 = vst [vmem:[#allocation2] sm:$0x1] %v12_v12 }
   0x3   :  { %v35_v4 = vld [vmem:[%s336_s2] sm:$0xff]  ;;  %89 = vmatpush.bf16.msra.mxu0 %v233_v0  ;;  %v112_v8 = vld [vmem:[%s337_s4 + $0x8] sm:$0xff]  ;;  %127 = vperm.xlu2 %241, %v113_v11   ;;  %v114_v15 = vld [vmem:[%s337_s4 + $0x18] sm:$0xff] }
   0x4   :  { %41 = vperm.xlu1 %240, %v35_v4   ;;  %v111_v7 = vld [vmem:[%s337_s4] sm:$0xff]  ;;  %v232_v9 = vld [vmem:[%s335_s1 + $0x8] sm:$0xff] }
   0x5   :  { %v234_v32 = vld [vmem:[%s339_s3] sm:$0xff]  ;;  %v235_v33 = vld [vmem:[%s339_s3 + $0x8] sm:$0xff] }
   0x6   :  { %218 = vmatmul.msk.bf16.vlgmr.msra.gmra.mxu0 %vm75_vm0, %v231_v3  ;;  %v175_v52 = vld [vmem:[%s340_s5] sm:$0x1] }
   0x9   :  { %v178_v18 = vld [vmem:[#allocation2] sm:$0x1] }
   0xa   :  { %56 = vperm.xlu0 %239, %v38_v5  }
   0xb   :  { %132 = vperm.xlu2 %241, %v114_v15  }
   0xc   :  { %46 = vperm.xlu1 %240, %v36_v6  }
  0x12   :  { %117 = vperm.xlu0 %239, %v111_v7  }
  0x13   :  { %181 = vperm.xlu2 %241, %v178_v18  }
  0x14   :  { %122 = vperm.xlu1 %240, %v112_v8  }
  0x16   :  { %219 = vmatmul.msk.bf16.gmra.mxu0 %vm75_vm0, %v232_v9 }
  0x5d   :  { %v128_v35 = vpop.permute.xlu2 %127 }
  0x65   :  { %v133_v40 = vpop.permute.xlu2 %132 }
  0x6d   :  { %v182_v53 = vpop.permute.xlu2 %181 }
  0x6e   :  { %v184_v54 = vperm.slane %v182_v53, 0 }
  0x74   :  { %v52_v16 = vpop.permute.xlu0 %51 }
  0x76   :  { %v42_v14 = vpop.permute.xlu1 %41 }
  0x7c   :  { %v57_v21 = vpop.permute.xlu0 %56 }
  0x7e   :  { %v47_v19 = vpop.permute.xlu1 %46 }
  0x83   :  { %v91_v10 = vpop.f32.mrf.mxu0 }
  0x84   :  { %v92_v25 = vadd.f32 %v91_v10, %v42_v14  ;;  %v118_v44 = vpop.permute.xlu0 %117 }
  0x86   :  { %v101_v30 = vmax.f32 %v92_v25, 0.0  ;;  %v123_v38 = vpop.permute.xlu1 %122 }
  0x8b   :  { %v93_v13 = vpop.f32.mrf.mxu0 }
  0x8c   :  { %v94_v23 = vadd.f32 %v93_v13, %v47_v19 }
  0x8e   :  { %v102_v28 = vmax.f32 %v94_v23, 0.0 }
  0x90   :  { %v109_v31 = vpack.c.bf16 %v102_v28, %v101_v30 }
  0x93   :  { %v96_v17 = vpop.f32.mrf.mxu0 }
  0x94   :  { %v97_v20 = vadd.f32 %v96_v17, %v52_v16 }
  0x96   :  { %v103_v26 = vmax.f32 %v97_v20, 0.0 }
  0x9b   :  { %v98_v22 = vpop.f32.mrf.mxu0 }
  0x9c   :  { %v99_v24 = vadd.f32 %v98_v22, %v57_v21 }
  0x9e   :  { %v104_v27 = vmax.f32 %v99_v24, 0.0 }
  0xa0   :  { %v110_v29 = vpack.c.bf16 %v104_v27, %v103_v26 }
  0xa2   :  { %158 = vmatpush.bf16.msra.mxu1 %v110_v29  ;;  %236 = vmatpush.bf16.msra.mxu3 %v110_v29 }
  0xa6   :  { %159 = vmatpush.bf16.msra.mxu1 %v109_v31  ;;  %237 = vmatpush.bf16.msra.mxu3 %v109_v31 }
  0xa9   :  { %228 = vmatmul.msk.bf16.vlgmr.msra.gmra.mxu1 %vm145_vm1, %v234_v32  ;;  %229 = vmatmul.msk.bf16.vlgmr.msra.gmra.mxu3 %vm145_vm1, %v235_v33 }
 0x126   :  { %v161_v34 = vpop.f32.mrf.mxu1 }
 0x127   :  { %v162_v45 = vadd.f32 %v161_v34, %v118_v44 }
 0x129   :  { %v171_v50 = vmax.f32 %v162_v45, 0.0 }
 0x12c   :  { %v166_v36 = vpop.f32.mrf.mxu3 }
 0x12d   :  { %v167_v39 = vadd.f32 %v166_v36, %v128_v35 }
 0x12e   :  { %v163_v37 = vpop.f32.mrf.mxu1 }
 0x12f   :  { %v164_v42 = vadd.f32 %v163_v37, %v123_v38  ;;  %v173_v46 = vmax.f32 %v167_v39, 0.0 }
 0x131   :  { %v172_v48 = vmax.f32 %v164_v42, 0.0 }
 0x133   :  { %v176_v51 = vpack.c.bf16 %v172_v48, %v171_v50 }
 0x134   :  { %v168_v41 = vpop.f32.mrf.mxu3 }
 0x135   :  { %v169_v43 = vadd.f32 %v168_v41, %v133_v40 }
 0x137   :  { %v174_v47 = vmax.f32 %v169_v43, 0.0 }
 0x139   :  { %v177_v49 = vpack.c.bf16 %v174_v47, %v173_v46 }
 0x13b   :  { %194 = vmatpush.bf16.msra.mxu2 %v177_v49 }
 0x13f   :  { %195 = vmatpush.bf16.msra.mxu2 %v176_v51 }
 0x142   :  { %230 = vmatmul.msk.bf16.vlgmr.msra.gmra.mxu2 %vm145_vm1, %v175_v52 }
 0x1c5   :  { %v197_v55 = vpop.f32.mrf.mxu2 }
 0x1c6   :  { %v198_v56 = vadd.f32 %v197_v55, %v184_v54 }
 0x1c8   :  { %201 = vst [vmem:[%s341_s7] sm:$0x1] %v198_v56 }
 0x1cd   :  { %v199_v57 = vpop.f32.mrf.mxu2 }

</bundles_post_ra>
